<compile_context>
chip_gen: v5e
topology: v5e:2x2
jax: 0.10.0
libtpu: 0.0.40
codegen_flags: <defaults>
</compile_context>

<pallas_src>
import functools

import jax
import jax.numpy as jnp
from jax.experimental import pallas as pl
from jax.experimental.pallas import tpu as pltpu


MAX_BATCH_TILE = 128  # MXU rows per grid step (use 256 on v6e/v7x at scale)


def _round_up(n, m):
    return ((n + m - 1) // m) * m


def bilstm_kernel(x_ref, wp_ref, out_ref, xproj_ref, *, H, T, TB, DP):
    """One batch tile of the BiLSTM forward.

    x_ref    : (T, TB, DP)  time-major input tile (batch/feature zero-padded)
    wp_ref   : (R, 8H)      packed params (see pack_params for the layout)
    out_ref  : (TB, 128)    column 0 holds fc(concat(h_fwd, h_bwd)) at t=T-1
    xproj_ref: (T*TB, 8H)   VMEM scratch for the hoisted input projection
    """
    G4, G8 = 4 * H, 8 * H
    OFF_WHH = DP
    OFF_BIAS = DP + G4
    OFF_HEAD = OFF_BIAS + 8
    OFF_FCB = OFF_HEAD + G8

    # Fused input projection for every step and both directions (+ bias),
    # parked in VMEM scratch so the serial loop only reads per-step slabs.
    x2d = x_ref[...].reshape(T * TB, DP)
    xproj_ref[...] = (
        jnp.dot(x2d, wp_ref[0:DP, :], preferred_element_type=jnp.float32)
        + wp_ref[OFF_BIAS:OFF_BIAS + 1, :])

    # W_hh widened to (4H, 4H): real rows [0, H), zero rows elsewhere, so the
    # 4H-wide h operand feeds the MXU with no narrow slicing.
    whh = wp_ref[OFF_WHH:OFF_WHH + G4, 0:G4]

    # Constant lane masks, hoisted out of the unrolled time loop.
    lane = jax.lax.broadcasted_iota(jnp.int32, (TB, G4), 1)
    sig_mask = lane < 3 * H
    c_mask = lane < H

    def cell(gates, c):
        # gates / c: (TB, 4H); real state lives in lanes [0, H).
        act = jnp.where(sig_mask, jax.nn.sigmoid(gates), jnp.tanh(gates))
        ig = act * pltpu.roll(act, H, axis=1)           # lanes [0,H): i * g
        fc = pltpu.roll(act, 3 * H, axis=1) * c         # lanes [0,H): f * c
        c_new = jnp.where(c_mask, ig + fc, 0.0)
        h_new = pltpu.roll(act, 2 * H, axis=1) * jnp.tanh(c_new)  # o*tanh(c)
        return h_new, c_new                             # lanes >= H are zero

    h = jnp.zeros((TB, G4), jnp.float32)
    c = jnp.zeros((TB, G4), jnp.float32)
    # T is static and small: fully unrolled -> constant aligned offsets and
    # cross-step scheduler visibility.
    for t in range(T):
        xp = xproj_ref[t * TB:(t + 1) * TB, 0:G4]
        if t == 0:
            gates = xp                                  # h == 0, skip matmul
        else:
            gates = xp + jnp.dot(h, whh, preferred_element_type=jnp.float32)
        h, c = cell(gates, c)

    # Backward direction at the last time index == first reverse step from a
    # zero state: the h @ W_hh_b term vanishes.
    h_b, _ = cell(xproj_ref[(T - 1) * TB:T * TB, G4:G8],
                  jnp.zeros((TB, G4), jnp.float32))

    # Fused head: single (TB, 8H) @ (8H, 128) matmul, lane-dense store.
    h_cat = jnp.concatenate([h, h_b], axis=1)           # (TB, 8H)
    out_ref[...] = (
        jnp.dot(h_cat, wp_ref[OFF_HEAD:OFF_HEAD + G8, 0:128],
                preferred_element_type=jnp.float32)
        + wp_ref[OFF_FCB:OFF_FCB + 1, 0:128])


def prepare_x(x):
    """(B, T, D) -> time-major (T, Bp, Dp), batch/feature zero-padded.

    Done ONCE at setup (not per call) per the perf review.
    """
    B, T, D = x.shape
    DP = max(8, _round_up(D, 8))
    Bp = _round_up(B, 8)
    tile_b = min(Bp, MAX_BATCH_TILE)
    Bp = _round_up(Bp, tile_b)
    x_pad = jnp.zeros((Bp, T, DP), jnp.float32).at[:B, :, :D].set(x)
    return jnp.transpose(x_pad, (1, 0, 2))


def bilstm_predict(x_tm, wp, *, hidden_size, batch):
    """x_tm: (T, Bp, Dp) from prepare_x; wp: packed params -> (batch, 1)."""
    T, Bp, DP = x_tm.shape
    R, G8 = wp.shape
    tile_b = min(Bp, MAX_BATCH_TILE)
    kernel = functools.partial(bilstm_kernel, H=hidden_size, T=T,
                               TB=tile_b, DP=DP)

    out_pad = pl.pallas_call(
        kernel,
        out_shape=jax.ShapeDtypeStruct((Bp, 128), jnp.float32),
        grid_spec=pltpu.PrefetchScalarGridSpec(
            num_scalar_prefetch=0,
            grid=(Bp // tile_b,),                         # batch-parallel axis
            in_specs=[
                pl.BlockSpec((T, tile_b, DP), lambda b: (0, b, 0)),
                pl.BlockSpec((R, G8), lambda b: (0, 0)),  # params: one block
            ],
            out_specs=pl.BlockSpec((tile_b, 128), lambda b: (b, 0)),
            scratch_shapes=[pltpu.VMEM((T * tile_b, G8), jnp.float32)],
        ),
        compiler_params=pltpu.CompilerParams(
            dimension_semantics=("parallel",),
            vmem_limit_bytes=32 * 1024 * 1024,
        ),
    )(x_tm, wp)
    return out_pad[:batch, :1]


def init_params(key, input_size, hidden_size):
    """Raw PyTorch-layout parameters (gate row order [i, f, g, o])."""
    H = hidden_size
    ks = jax.random.split(key, 10)
    bound = 1.0 / float(jnp.sqrt(jnp.float32(H)))

    def u(k, shape, b=bound):
        return jax.random.uniform(k, shape, jnp.float32, -b, b)

    fc_bound = 1.0 / float(jnp.sqrt(jnp.float32(2 * H)))
    return {
        "w_ih_f": u(ks[0], (4 * H, input_size)),
        "w_hh_f": u(ks[1], (4 * H, H)),
        "b_ih_f": u(ks[2], (4 * H,)),
        "b_hh_f": u(ks[3], (4 * H,)),
        "w_ih_b": u(ks[4], (4 * H, input_size)),
        "w_hh_b": u(ks[5], (4 * H, H)),
        "b_ih_b": u(ks[6], (4 * H,)),
        "b_hh_b": u(ks[7], (4 * H,)),
        "fc_w": u(ks[8], (1, 2 * H), fc_bound),
        "fc_b": u(ks[9], (1,), fc_bound),
    }


def pack_params(raw, input_size, hidden_size):
    """PyTorch layout -> ONE packed (R, 8H) kernel buffer.

    Row layout (all section offsets multiples of 8 sublanes):
      [0, Dp)              : fused input-proj weights  [fwd i,f,o,g | bwd ...]
      [Dp, Dp+4H)          : widened forward W_hh (real rows [0,H), lanes 0:4H)
      [Dp+4H, +8)          : fused bias b_ih + b_hh   (1, 8H)
      [.., +8H)            : head weight (8H, 128-lane slab), real col 0 at
                             rows [0,H) (fwd fc) and [4H,5H) (bwd fc)
      [.., +8)             : fc bias row (col 0)
    Gate rows permuted [i,f,g,o] -> [i,f,o,g]; weights transposed to (in, 4H).
    """
    H = hidden_size
    D = input_size
    DP = max(8, _round_up(D, 8))
    G4, G8 = 4 * H, 8 * H
    OFF_WHH = DP
    OFF_BIAS = DP + G4
    OFF_HEAD = OFF_BIAS + 8
    OFF_FCB = OFF_HEAD + G8
    R = OFF_FCB + 8

    perm = jnp.concatenate([jnp.arange(0, 2 * H),
                            jnp.arange(3 * H, 4 * H),
                            jnp.arange(2 * H, 3 * H)])

    wp = jnp.zeros((R, G8), jnp.float32)
    wp = wp.at[0:D, 0:G4].set(raw["w_ih_f"][perm].T)
    wp = wp.at[0:D, G4:G8].set(raw["w_ih_b"][perm].T)
    wp = wp.at[OFF_WHH:OFF_WHH + H, 0:G4].set(raw["w_hh_f"][perm].T)
    wp = wp.at[OFF_BIAS, 0:G4].set((raw["b_ih_f"] + raw["b_hh_f"])[perm])
    wp = wp.at[OFF_BIAS, G4:G8].set((raw["b_ih_b"] + raw["b_hh_b"])[perm])
    wp = wp.at[OFF_HEAD:OFF_HEAD + H, 0].set(raw["fc_w"][0, :H])
    wp = wp.at[OFF_HEAD + G4:OFF_HEAD + G4 + H, 0].set(raw["fc_w"][0, H:])
    wp = wp.at[OFF_FCB, 0].set(raw["fc_b"][0])
    return wp


def reference_forward(x, raw, hidden_size):
    """Plain-JAX reference of the PyTorch forward (eval mode), gate order
    [i, f, g, o], with a FULL reverse scan (verifies that the kernel's
    backward shortcut is exact for out[:, -1, :])."""
    H = hidden_size
    B, T, _ = x.shape

    def cell(x_t, h, c, w_ih, w_hh, b_ih, b_hh):
        g = x_t @ w_ih.T + h @ w_hh.T + b_ih + b_hh
        i = jax.nn.sigmoid(g[:, :H])
        f = jax.nn.sigmoid(g[:, H:2 * H])
        gg = jnp.tanh(g[:, 2 * H:3 * H])
        o = jax.nn.sigmoid(g[:, 3 * H:])
        c = f * c + i * gg
        h = o * jnp.tanh(c)
        return h, c

    h = jnp.zeros((B, H), jnp.float32)
    c = jnp.zeros((B, H), jnp.float32)
    for t in range(T):
        h, c = cell(x[:, t], h, c, raw["w_ih_f"], raw["w_hh_f"],
                    raw["b_ih_f"], raw["b_hh_f"])

    hb = jnp.zeros((B, H), jnp.float32)
    cb = jnp.zeros((B, H), jnp.float32)
    h_b_at_last = None
    for t in range(T - 1, -1, -1):
        hb, cb = cell(x[:, t], hb, cb, raw["w_ih_b"], raw["w_hh_b"],
                      raw["b_ih_b"], raw["b_hh_b"])
        if t == T - 1:
            h_b_at_last = hb

    feat = jnp.concatenate([h, h_b_at_last], axis=-1)
    return feat @ raw["fc_w"].T + raw["fc_b"]


if __name__ == "__main__":
    B, T, D, H = 2, 8, 4, 32

    key = jax.random.PRNGKey(0)
    k_x, k_p = jax.random.split(key)
    x = jax.random.normal(k_x, (B, T, D), dtype=jnp.float32)

    raw = init_params(k_p, D, H)
    wp = pack_params(raw, D, H)

    x_tm = prepare_x(x)  # one-time layout at setup, not per call
    predict = jax.jit(functools.partial(bilstm_predict,
                                        hidden_size=H, batch=B))
    out = jax.block_until_ready(predict(x_tm, wp))

    ref = reference_forward(x, raw, H)
    assert out.shape == (B, 1)
    assert jnp.allclose(out, ref, rtol=1e-5, atol=1e-5), (out, ref)

    print("KERNEL_OK")
</pallas_src>

<mosaic_0001>
module attributes {stable_mosaic.version = 11 : i64} {
  func.func @bilstm_kernel(%arg0: i32, %arg1: memref<8x8x8xf32, #tpu.memory_space<vmem>>, %arg2: memref<408x256xf32, #tpu.memory_space<vmem>>, %arg3: memref<8x128xf32, #tpu.memory_space<vmem>>, %arg4: memref<64x256xf32, #tpu.memory_space<vmem>>) attributes {dimension_semantics = [#tpu.dimension_semantics<parallel>], iteration_bounds = array<i64: 1>, scalar_prefetch = 0 : i64, scratch_operands = 1 : i64, tpu.core_type = #tpu.core_type<tc>, window_params = [{transform_indices = @transform_0, window_bounds = array<i64: 8, 8, 8>}, {pipeline_mode = #tpu.pipeline_mode<synchronous>, transform_indices = @transform_1, window_bounds = array<i64: 408, 256>}, {transform_indices = @transform_2, window_bounds = array<i64: 8, 128>}]} {
    %c0 = arith.constant 0 : index
    %c0_0 = arith.constant 0 : index
    %c0_1 = arith.constant 0 : index
    %0 = vector.load %arg1[%c0, %c0_0, %c0_1] : memref<8x8x8xf32, #tpu.memory_space<vmem>>, vector<8x8x8xf32>
    %1 = vector.shape_cast %0 : vector<8x8x8xf32> to vector<64x8xf32>
    %c0_2 = arith.constant 0 : index
    %c0_3 = arith.constant 0 : index
    %2 = vector.load %arg2[%c0_2, %c0_3] : memref<408x256xf32, #tpu.memory_space<vmem>>, vector<8x256xf32>
    %cst = arith.constant dense<0.000000e+00> : vector<64x256xf32>
    %3 = tpu.matmul %1, %2, %cst {dimension_numbers = #tpu.dot_dimension_numbers<[1], [0], [0], [1], [0, 0, 1, 1], [], []>} : vector<64x8xf32>, vector<8x256xf32>, vector<64x256xf32> -> vector<64x256xf32>
    %c136 = arith.constant 136 : index
    %c0_4 = arith.constant 0 : index
    %4 = vector.load %arg2[%c136, %c0_4] : memref<408x256xf32, #tpu.memory_space<vmem>>, vector<1x256xf32>
    %5 = vector.broadcast %4 : vector<1x256xf32> to vector<64x256xf32>
    %6 = arith.addf %3, %5 : vector<64x256xf32>
    %c0_5 = arith.constant 0 : index
    %c0_6 = arith.constant 0 : index
    %7 = vector.load %arg4[%c0_5, %c0_6] : memref<64x256xf32, #tpu.memory_space<vmem>>, vector<64x256xf32>
    tpu.vector_store %arg4[%c0_5, %c0_6], %6 {strides = array<i32>} : memref<64x256xf32, #tpu.memory_space<vmem>>, vector<64x256xf32>,
    %c8 = arith.constant 8 : index
    %c0_7 = arith.constant 0 : index
    %8 = vector.load %arg2[%c8, %c0_7] : memref<408x256xf32, #tpu.memory_space<vmem>>, vector<128x128xf32>
    %9 = tpu.iota {dimensions = array<i32: 1>} : vector<8x128xi32>
    %c96_i32 = arith.constant 96 : i32
    %10 = vector.broadcast %c96_i32 : i32 to vector<8x128xi32>
    %11 = arith.cmpi slt, %9, %10 : vector<8x128xi32>
    %c32_i32 = arith.constant 32 : i32
    %12 = vector.broadcast %c32_i32 : i32 to vector<8x128xi32>
    %13 = arith.cmpi slt, %9, %12 : vector<8x128xi32>
    %cst_8 = arith.constant 0.000000e+00 : f32
    %14 = vector.broadcast %cst_8 : f32 to vector<8x128xf32>
    %c0_9 = arith.constant 0 : index
    %c0_10 = arith.constant 0 : index
    %15 = vector.load %arg4[%c0_9, %c0_10] : memref<64x256xf32, #tpu.memory_space<vmem>>, vector<8x128xf32>
    %16 = arith.negf %15 : vector<8x128xf32>
    %17 = math.exp %16 : vector<8x128xf32>
    %cst_11 = arith.constant 1.000000e+00 : f32
    %18 = vector.broadcast %cst_11 : f32 to vector<8x128xf32>
    %19 = arith.addf %18, %17 : vector<8x128xf32>
    %20 = arith.divf %18, %19 : vector<8x128xf32>
    %21 = math.tanh %15 : vector<8x128xf32>
    %22 = arith.select %11, %20, %21 : vector<8x128xi1>, vector<8x128xf32>
    %c32_i32_12 = arith.constant 32 : i32
    %23 = tpu.dynamic_rotate %22 by %c32_i32_12 dim 1 : vector<8x128xf32>, i32 -> vector<8x128xf32>
    %24 = arith.mulf %22, %23 : vector<8x128xf32>
    %c96_i32_13 = arith.constant 96 : i32
    %25 = tpu.dynamic_rotate %22 by %c96_i32_13 dim 1 : vector<8x128xf32>, i32 -> vector<8x128xf32>
    %26 = arith.mulf %25, %14 : vector<8x128xf32>
    %27 = arith.addf %24, %26 : vector<8x128xf32>
    %cst_14 = arith.constant 0.000000e+00 : f32
    %28 = vector.broadcast %cst_14 : f32 to vector<8x128xf32>
    %29 = arith.select %13, %27, %28 : vector<8x128xi1>, vector<8x128xf32>
    %c64_i32 = arith.constant 64 : i32
    %30 = tpu.dynamic_rotate %22 by %c64_i32 dim 1 : vector<8x128xf32>, i32 -> vector<8x128xf32>
    %31 = math.tanh %29 : vector<8x128xf32>
    %32 = arith.mulf %30, %31 : vector<8x128xf32>
    %c8_15 = arith.constant 8 : index
    %c0_16 = arith.constant 0 : index
    %33 = vector.load %arg4[%c8_15, %c0_16] : memref<64x256xf32, #tpu.memory_space<vmem>>, vector<8x128xf32>
    %cst_17 = arith.constant dense<0.000000e+00> : vector<8x128xf32>
    %34 = tpu.matmul %32, %8, %cst_17 {dimension_numbers = #tpu.dot_dimension_numbers<[1], [0], [0], [1], [0, 0, 1, 1], [], []>} : vector<8x128xf32>, vector<128x128xf32>, vector<8x128xf32> -> vector<8x128xf32>
    %35 = arith.addf %33, %34 : vector<8x128xf32>
    %36 = arith.negf %35 : vector<8x128xf32>
    %37 = math.exp %36 : vector<8x128xf32>
    %cst_18 = arith.constant 1.000000e+00 : f32
    %38 = vector.broadcast %cst_18 : f32 to vector<8x128xf32>
    %39 = arith.addf %38, %37 : vector<8x128xf32>
    %40 = arith.divf %38, %39 : vector<8x128xf32>
    %41 = math.tanh %35 : vector<8x128xf32>
    %42 = arith.select %11, %40, %41 : vector<8x128xi1>, vector<8x128xf32>
    %c32_i32_19 = arith.constant 32 : i32
    %43 = tpu.dynamic_rotate %42 by %c32_i32_19 dim 1 : vector<8x128xf32>, i32 -> vector<8x128xf32>
    %44 = arith.mulf %42, %43 : vector<8x128xf32>
    %c96_i32_20 = arith.constant 96 : i32
    %45 = tpu.dynamic_rotate %42 by %c96_i32_20 dim 1 : vector<8x128xf32>, i32 -> vector<8x128xf32>
    %46 = arith.mulf %45, %29 : vector<8x128xf32>
    %47 = arith.addf %44, %46 : vector<8x128xf32>
    %cst_21 = arith.constant 0.000000e+00 : f32
    %48 = vector.broadcast %cst_21 : f32 to vector<8x128xf32>
    %49 = arith.select %13, %47, %48 : vector<8x128xi1>, vector<8x128xf32>
    %c64_i32_22 = arith.constant 64 : i32
    %50 = tpu.dynamic_rotate %42 by %c64_i32_22 dim 1 : vector<8x128xf32>, i32 -> vector<8x128xf32>
    %51 = math.tanh %49 : vector<8x128xf32>
    %52 = arith.mulf %50, %51 : vector<8x128xf32>
    %c16 = arith.constant 16 : index
    %c0_23 = arith.constant 0 : index
    %53 = vector.load %arg4[%c16, %c0_23] : memref<64x256xf32, #tpu.memory_space<vmem>>, vector<8x128xf32>
    %cst_24 = arith.constant dense<0.000000e+00> : vector<8x128xf32>
    %54 = tpu.matmul %52, %8, %cst_24 {dimension_numbers = #tpu.dot_dimension_numbers<[1], [0], [0], [1], [0, 0, 1, 1], [], []>} : vector<8x128xf32>, vector<128x128xf32>, vector<8x128xf32> -> vector<8x128xf32>
    %55 = arith.addf %53, %54 : vector<8x128xf32>
    %56 = arith.negf %55 : vector<8x128xf32>
    %57 = math.exp %56 : vector<8x128xf32>
    %cst_25 = arith.constant 1.000000e+00 : f32
    %58 = vector.broadcast %cst_25 : f32 to vector<8x128xf32>
    %59 = arith.addf %58, %57 : vector<8x128xf32>
    %60 = arith.divf %58, %59 : vector<8x128xf32>
    %61 = math.tanh %55 : vector<8x128xf32>
    %62 = arith.select %11, %60, %61 : vector<8x128xi1>, vector<8x128xf32>
    %c32_i32_26 = arith.constant 32 : i32
    %63 = tpu.dynamic_rotate %62 by %c32_i32_26 dim 1 : vector<8x128xf32>, i32 -> vector<8x128xf32>
    %64 = arith.mulf %62, %63 : vector<8x128xf32>
    %c96_i32_27 = arith.constant 96 : i32
    %65 = tpu.dynamic_rotate %62 by %c96_i32_27 dim 1 : vector<8x128xf32>, i32 -> vector<8x128xf32>
    %66 = arith.mulf %65, %49 : vector<8x128xf32>
    %67 = arith.addf %64, %66 : vector<8x128xf32>
    %cst_28 = arith.constant 0.000000e+00 : f32
    %68 = vector.broadcast %cst_28 : f32 to vector<8x128xf32>
    %69 = arith.select %13, %67, %68 : vector<8x128xi1>, vector<8x128xf32>
    %c64_i32_29 = arith.constant 64 : i32
    %70 = tpu.dynamic_rotate %62 by %c64_i32_29 dim 1 : vector<8x128xf32>, i32 -> vector<8x128xf32>
    %71 = math.tanh %69 : vector<8x128xf32>
    %72 = arith.mulf %70, %71 : vector<8x128xf32>
    %c24 = arith.constant 24 : index
    %c0_30 = arith.constant 0 : index
    %73 = vector.load %arg4[%c24, %c0_30] : memref<64x256xf32, #tpu.memory_space<vmem>>, vector<8x128xf32>
    %cst_31 = arith.constant dense<0.000000e+00> : vector<8x128xf32>
    %74 = tpu.matmul %72, %8, %cst_31 {dimension_numbers = #tpu.dot_dimension_numbers<[1], [0], [0], [1], [0, 0, 1, 1], [], []>} : vector<8x128xf32>, vector<128x128xf32>, vector<8x128xf32> -> vector<8x128xf32>
    %75 = arith.addf %73, %74 : vector<8x128xf32>
    %76 = arith.negf %75 : vector<8x128xf32>
    %77 = math.exp %76 : vector<8x128xf32>
    %cst_32 = arith.constant 1.000000e+00 : f32
    %78 = vector.broadcast %cst_32 : f32 to vector<8x128xf32>
    %79 = arith.addf %78, %77 : vector<8x128xf32>
    %80 = arith.divf %78, %79 : vector<8x128xf32>
    %81 = math.tanh %75 : vector<8x128xf32>
    %82 = arith.select %11, %80, %81 : vector<8x128xi1>, vector<8x128xf32>
    %c32_i32_33 = arith.constant 32 : i32
    %83 = tpu.dynamic_rotate %82 by %c32_i32_33 dim 1 : vector<8x128xf32>, i32 -> vector<8x128xf32>
    %84 = arith.mulf %82, %83 : vector<8x128xf32>
    %c96_i32_34 = arith.constant 96 : i32
    %85 = tpu.dynamic_rotate %82 by %c96_i32_34 dim 1 : vector<8x128xf32>, i32 -> vector<8x128xf32>
    %86 = arith.mulf %85, %69 : vector<8x128xf32>
    %87 = arith.addf %84, %86 : vector<8x128xf32>
    %cst_35 = arith.constant 0.000000e+00 : f32
    %88 = vector.broadcast %cst_35 : f32 to vector<8x128xf32>
    %89 = arith.select %13, %87, %88 : vector<8x128xi1>, vector<8x128xf32>
    %c64_i32_36 = arith.constant 64 : i32
    %90 = tpu.dynamic_rotate %82 by %c64_i32_36 dim 1 : vector<8x128xf32>, i32 -> vector<8x128xf32>
    %91 = math.tanh %89 : vector<8x128xf32>
    %92 = arith.mulf %90, %91 : vector<8x128xf32>
    %c32 = arith.constant 32 : index
    %c0_37 = arith.constant 0 : index
    %93 = vector.load %arg4[%c32, %c0_37] : memref<64x256xf32, #tpu.memory_space<vmem>>, vector<8x128xf32>
    %cst_38 = arith.constant dense<0.000000e+00> : vector<8x128xf32>
    %94 = tpu.matmul %92, %8, %cst_38 {dimension_numbers = #tpu.dot_dimension_numbers<[1], [0], [0], [1], [0, 0, 1, 1], [], []>} : vector<8x128xf32>, vector<128x128xf32>, vector<8x128xf32> -> vector<8x128xf32>
    %95 = arith.addf %93, %94 : vector<8x128xf32>
    %96 = arith.negf %95 : vector<8x128xf32>
    %97 = math.exp %96 : vector<8x128xf32>
    %cst_39 = arith.constant 1.000000e+00 : f32
    %98 = vector.broadcast %cst_39 : f32 to vector<8x128xf32>
    %99 = arith.addf %98, %97 : vector<8x128xf32>
    %100 = arith.divf %98, %99 : vector<8x128xf32>
    %101 = math.tanh %95 : vector<8x128xf32>
    %102 = arith.select %11, %100, %101 : vector<8x128xi1>, vector<8x128xf32>
    %c32_i32_40 = arith.constant 32 : i32
    %103 = tpu.dynamic_rotate %102 by %c32_i32_40 dim 1 : vector<8x128xf32>, i32 -> vector<8x128xf32>
    %104 = arith.mulf %102, %103 : vector<8x128xf32>
    %c96_i32_41 = arith.constant 96 : i32
    %105 = tpu.dynamic_rotate %102 by %c96_i32_41 dim 1 : vector<8x128xf32>, i32 -> vector<8x128xf32>
    %106 = arith.mulf %105, %89 : vector<8x128xf32>
    %107 = arith.addf %104, %106 : vector<8x128xf32>
    %cst_42 = arith.constant 0.000000e+00 : f32
    %108 = vector.broadcast %cst_42 : f32 to vector<8x128xf32>
    %109 = arith.select %13, %107, %108 : vector<8x128xi1>, vector<8x128xf32>
    %c64_i32_43 = arith.constant 64 : i32
    %110 = tpu.dynamic_rotate %102 by %c64_i32_43 dim 1 : vector<8x128xf32>, i32 -> vector<8x128xf32>
    %111 = math.tanh %109 : vector<8x128xf32>
    %112 = arith.mulf %110, %111 : vector<8x128xf32>
    %c40 = arith.constant 40 : index
    %c0_44 = arith.constant 0 : index
    %113 = vector.load %arg4[%c40, %c0_44] : memref<64x256xf32, #tpu.memory_space<vmem>>, vector<8x128xf32>
    %cst_45 = arith.constant dense<0.000000e+00> : vector<8x128xf32>
    %114 = tpu.matmul %112, %8, %cst_45 {dimension_numbers = #tpu.dot_dimension_numbers<[1], [0], [0], [1], [0, 0, 1, 1], [], []>} : vector<8x128xf32>, vector<128x128xf32>, vector<8x128xf32> -> vector<8x128xf32>
    %115 = arith.addf %113, %114 : vector<8x128xf32>
    %116 = arith.negf %115 : vector<8x128xf32>
    %117 = math.exp %116 : vector<8x128xf32>
    %cst_46 = arith.constant 1.000000e+00 : f32
    %118 = vector.broadcast %cst_46 : f32 to vector<8x128xf32>
    %119 = arith.addf %118, %117 : vector<8x128xf32>
    %120 = arith.divf %118, %119 : vector<8x128xf32>
    %121 = math.tanh %115 : vector<8x128xf32>
    %122 = arith.select %11, %120, %121 : vector<8x128xi1>, vector<8x128xf32>
    %c32_i32_47 = arith.constant 32 : i32
    %123 = tpu.dynamic_rotate %122 by %c32_i32_47 dim 1 : vector<8x128xf32>, i32 -> vector<8x128xf32>
    %124 = arith.mulf %122, %123 : vector<8x128xf32>
    %c96_i32_48 = arith.constant 96 : i32
    %125 = tpu.dynamic_rotate %122 by %c96_i32_48 dim 1 : vector<8x128xf32>, i32 -> vector<8x128xf32>
    %126 = arith.mulf %125, %109 : vector<8x128xf32>
    %127 = arith.addf %124, %126 : vector<8x128xf32>
    %cst_49 = arith.constant 0.000000e+00 : f32
    %128 = vector.broadcast %cst_49 : f32 to vector<8x128xf32>
    %129 = arith.select %13, %127, %128 : vector<8x128xi1>, vector<8x128xf32>
    %c64_i32_50 = arith.constant 64 : i32
    %130 = tpu.dynamic_rotate %122 by %c64_i32_50 dim 1 : vector<8x128xf32>, i32 -> vector<8x128xf32>
    %131 = math.tanh %129 : vector<8x128xf32>
    %132 = arith.mulf %130, %131 : vector<8x128xf32>
    %c48 = arith.constant 48 : index
    %c0_51 = arith.constant 0 : index
    %133 = vector.load %arg4[%c48, %c0_51] : memref<64x256xf32, #tpu.memory_space<vmem>>, vector<8x128xf32>
    %cst_52 = arith.constant dense<0.000000e+00> : vector<8x128xf32>
    %134 = tpu.matmul %132, %8, %cst_52 {dimension_numbers = #tpu.dot_dimension_numbers<[1], [0], [0], [1], [0, 0, 1, 1], [], []>} : vector<8x128xf32>, vector<128x128xf32>, vector<8x128xf32> -> vector<8x128xf32>
    %135 = arith.addf %133, %134 : vector<8x128xf32>
    %136 = arith.negf %135 : vector<8x128xf32>
    %137 = math.exp %136 : vector<8x128xf32>
    %cst_53 = arith.constant 1.000000e+00 : f32
    %138 = vector.broadcast %cst_53 : f32 to vector<8x128xf32>
    %139 = arith.addf %138, %137 : vector<8x128xf32>
    %140 = arith.divf %138, %139 : vector<8x128xf32>
    %141 = math.tanh %135 : vector<8x128xf32>
    %142 = arith.select %11, %140, %141 : vector<8x128xi1>, vector<8x128xf32>
    %c32_i32_54 = arith.constant 32 : i32
    %143 = tpu.dynamic_rotate %142 by %c32_i32_54 dim 1 : vector<8x128xf32>, i32 -> vector<8x128xf32>
    %144 = arith.mulf %142, %143 : vector<8x128xf32>
    %c96_i32_55 = arith.constant 96 : i32
    %145 = tpu.dynamic_rotate %142 by %c96_i32_55 dim 1 : vector<8x128xf32>, i32 -> vector<8x128xf32>
    %146 = arith.mulf %145, %129 : vector<8x128xf32>
    %147 = arith.addf %144, %146 : vector<8x128xf32>
    %cst_56 = arith.constant 0.000000e+00 : f32
    %148 = vector.broadcast %cst_56 : f32 to vector<8x128xf32>
    %149 = arith.select %13, %147, %148 : vector<8x128xi1>, vector<8x128xf32>
    %c64_i32_57 = arith.constant 64 : i32
    %150 = tpu.dynamic_rotate %142 by %c64_i32_57 dim 1 : vector<8x128xf32>, i32 -> vector<8x128xf32>
    %151 = math.tanh %149 : vector<8x128xf32>
    %152 = arith.mulf %150, %151 : vector<8x128xf32>
    %c56 = arith.constant 56 : index
    %c0_58 = arith.constant 0 : index
    %153 = vector.load %arg4[%c56, %c0_58] : memref<64x256xf32, #tpu.memory_space<vmem>>, vector<8x128xf32>
    %cst_59 = arith.constant dense<0.000000e+00> : vector<8x128xf32>
    %154 = tpu.matmul %152, %8, %cst_59 {dimension_numbers = #tpu.dot_dimension_numbers<[1], [0], [0], [1], [0, 0, 1, 1], [], []>} : vector<8x128xf32>, vector<128x128xf32>, vector<8x128xf32> -> vector<8x128xf32>
    %155 = arith.addf %153, %154 : vector<8x128xf32>
    %156 = arith.negf %155 : vector<8x128xf32>
    %157 = math.exp %156 : vector<8x128xf32>
    %cst_60 = arith.constant 1.000000e+00 : f32
    %158 = vector.broadcast %cst_60 : f32 to vector<8x128xf32>
    %159 = arith.addf %158, %157 : vector<8x128xf32>
    %160 = arith.divf %158, %159 : vector<8x128xf32>
    %161 = math.tanh %155 : vector<8x128xf32>
    %162 = arith.select %11, %160, %161 : vector<8x128xi1>, vector<8x128xf32>
    %c32_i32_61 = arith.constant 32 : i32
    %163 = tpu.dynamic_rotate %162 by %c32_i32_61 dim 1 : vector<8x128xf32>, i32 -> vector<8x128xf32>
    %164 = arith.mulf %162, %163 : vector<8x128xf32>
    %c96_i32_62 = arith.constant 96 : i32
    %165 = tpu.dynamic_rotate %162 by %c96_i32_62 dim 1 : vector<8x128xf32>, i32 -> vector<8x128xf32>
    %166 = arith.mulf %165, %149 : vector<8x128xf32>
    %167 = arith.addf %164, %166 : vector<8x128xf32>
    %cst_63 = arith.constant 0.000000e+00 : f32
    %168 = vector.broadcast %cst_63 : f32 to vector<8x128xf32>
    %169 = arith.select %13, %167, %168 : vector<8x128xi1>, vector<8x128xf32>
    %c64_i32_64 = arith.constant 64 : i32
    %170 = tpu.dynamic_rotate %162 by %c64_i32_64 dim 1 : vector<8x128xf32>, i32 -> vector<8x128xf32>
    %171 = math.tanh %169 : vector<8x128xf32>
    %172 = arith.mulf %170, %171 : vector<8x128xf32>
    %c56_65 = arith.constant 56 : index
    %c128 = arith.constant 128 : index
    %173 = vector.load %arg4[%c56_65, %c128] : memref<64x256xf32, #tpu.memory_space<vmem>>, vector<8x128xf32>
    %cst_66 = arith.constant 0.000000e+00 : f32
    %174 = vector.broadcast %cst_66 : f32 to vector<8x128xf32>
    %175 = arith.negf %173 : vector<8x128xf32>
    %176 = math.exp %175 : vector<8x128xf32>
    %cst_67 = arith.constant 1.000000e+00 : f32
    %177 = vector.broadcast %cst_67 : f32 to vector<8x128xf32>
    %178 = arith.addf %177, %176 : vector<8x128xf32>
    %179 = arith.divf %177, %178 : vector<8x128xf32>
    %180 = math.tanh %173 : vector<8x128xf32>
    %181 = arith.select %11, %179, %180 : vector<8x128xi1>, vector<8x128xf32>
    %c32_i32_68 = arith.constant 32 : i32
    %182 = tpu.dynamic_rotate %181 by %c32_i32_68 dim 1 : vector<8x128xf32>, i32 -> vector<8x128xf32>
    %183 = arith.mulf %181, %182 : vector<8x128xf32>
    %c96_i32_69 = arith.constant 96 : i32
    %184 = tpu.dynamic_rotate %181 by %c96_i32_69 dim 1 : vector<8x128xf32>, i32 -> vector<8x128xf32>
    %185 = arith.mulf %184, %174 : vector<8x128xf32>
    %186 = arith.addf %183, %185 : vector<8x128xf32>
    %cst_70 = arith.constant 0.000000e+00 : f32
    %187 = vector.broadcast %cst_70 : f32 to vector<8x128xf32>
    %188 = arith.select %13, %186, %187 : vector<8x128xi1>, vector<8x128xf32>
    %c64_i32_71 = arith.constant 64 : i32
    %189 = tpu.dynamic_rotate %181 by %c64_i32_71 dim 1 : vector<8x128xf32>, i32 -> vector<8x128xf32>
    %190 = math.tanh %188 : vector<8x128xf32>
    %191 = arith.mulf %189, %190 : vector<8x128xf32>
    %192 = tpu.concatenate %172, %191 in 1 : vector<8x128xf32>, vector<8x128xf32> -> vector<8x256xf32>
    %c144 = arith.constant 144 : index
    %c0_72 = arith.constant 0 : index
    %193 = vector.load %arg2[%c144, %c0_72] : memref<408x256xf32, #tpu.memory_space<vmem>>, vector<256x128xf32>
    %cst_73 = arith.constant dense<0.000000e+00> : vector<8x128xf32>
    %194 = tpu.matmul %192, %193, %cst_73 {dimension_numbers = #tpu.dot_dimension_numbers<[1], [0], [0], [1], [0, 0, 1, 1], [], []>} : vector<8x256xf32>, vector<256x128xf32>, vector<8x128xf32> -> vector<8x128xf32>
    %c400 = arith.constant 400 : index
    %c0_74 = arith.constant 0 : index
    %195 = vector.load %arg2[%c400, %c0_74] : memref<408x256xf32, #tpu.memory_space<vmem>>, vector<1x128xf32>
    %196 = vector.broadcast %195 : vector<1x128xf32> to vector<8x128xf32>
    %197 = arith.addf %194, %196 : vector<8x128xf32>
    %c0_75 = arith.constant 0 : index
    %c0_76 = arith.constant 0 : index
    %198 = vector.load %arg3[%c0_75, %c0_76] : memref<8x128xf32, #tpu.memory_space<vmem>>, vector<8x128xf32>
    tpu.vector_store %arg3[%c0_75, %c0_76], %197 {strides = array<i32>} : memref<8x128xf32, #tpu.memory_space<vmem>>, vector<8x128xf32>,
    return
  }
  func.func @transform_0(%arg0: i32) -> (i32, i32, i32) {
    %c0_i32 = arith.constant 0 : i32
    %c0_i32_0 = arith.constant 0 : i32
    %c0_i32_1 = arith.constant 0 : i32
    return %c0_i32, %arg0, %c0_i32_0 : i32, i32, i32
  }
  func.func @transform_1(%arg0: i32) -> (i32, i32) {
    %c0_i32 = arith.constant 0 : i32
    %c0_i32_0 = arith.constant 0 : i32
    %c0_i32_1 = arith.constant 0 : i32
    return %c0_i32, %c0_i32_0 : i32, i32
  }
  func.func @transform_2(%arg0: i32) -> (i32, i32) {
    %c0_i32 = arith.constant 0 : i32
    %c0_i32_0 = arith.constant 0 : i32
    return %arg0, %c0_i32 : i32, i32
  }
}

</mosaic_0001>

<bundles_post_ra>
// kernel: bilstm_predict.1
= control target key start
LH: loop header
LB: loop body
LE: loop exit
PB: predicated region body
PF: predicated region fallthrough
CT: control target
= control target key end

     0   :  { %7 = vsyncpa [#allocation4], 0  ;;  %s1231_s0 = inlined_call_operand.hbm [shape: f32[8,8,8], index: 0, kind: input, shape index: {}]   ;;  %s1232_s1 = inlined_call_operand.hbm [shape: f32[408,256], index: 1, kind: input, shape index: {}]   ;;  %s1233_s2 = inlined_call_operand.vmem [shape: f32[8,128], index: 2, kind: output, shape index: {}]  }
   0x1   :  { %s13_s11 = sshll.u32 %s1231_s0, 4  ;;  %s14_s11 = int_to_ptr.hbm [resolvable:$true] %s13_s11 }
   0x2   :  { %8 = vsyncpa [#allocation6], 0  ;;  %s895_s12 = smov [#allocation3]   ;;  %s26_s16 = sshll.u32 %s1232_s1, 4  ;;  %s27_s16 = int_to_ptr.hbm [resolvable:$true] %s26_s16 }
   0x3   :  { %s15_s13 = sshll.u32 %s895_s12, 4  ;;  %s896_s17 = smov 128   ;;  %s16_s13 = int_to_ptr.vmem [resolvable:$true] %s15_s13 }
   0x4   :  { %s897_s18 = smov 8   ;;  %s898_s19 = smov [#allocation5]  }
   0x5   :  { %21 = dma.hbm_to_vmem [thread:$0]  %s14_s11, 1024, %s16_s13, [#allocation4], %s896_s17, %s896_s17, %s897_s18  }
   0x6   :  { %s28_s20 = sshll.u32 %s898_s19, 4  ;;  %s899_s21 = smov 256   ;;  %s29_s20 = int_to_ptr.vmem [resolvable:$true] %s28_s20 }
   0x7   :  { %s900_s22 = smov 16  }
   0x8   :  { %34 = dma.hbm_to_vmem [thread:$0]  %s27_s16, 13056, %s29_s20, [#allocation6], %s899_s21, %s899_s21, %s900_s22  }
   0x9   :  { %891 = dma.done.wait [#allocation4], 1024  }
   0xa   :  { %892 = vsyncadd [#allocation4], 4294966272 }
   0xb   :  { %893 = dma.done.wait [#allocation6], 13056  }
   0xc   :  { %894 = vsyncadd [#allocation6], 4294954240  ;;  %vm60_vm0 = vcmask 64512   ;;  %v51_v0 = vld [vmem:[#allocation5] sm:$0xff]  ;;  %v937_v8 = vld [vmem:[#allocation5 + $0xf0] sm:$0xff]  ;;  %v199_v15 = vlaneseq  ;;  %s901_s0 = smov 64  }
   0xd   :  { %v925_v1 = vld [vmem:[#allocation3] sm:$0xff]  ;;  %100 = vmatpush.msra.mxu0 %v51_v0  ;;  %761 = vmatpush.msra.mxu1 %v51_v0  ;;  %v929_v2 = vld [vmem:[#allocation5 + $0x110] ss:$8 sm:$0x3]  ;;  %s902_s1 = smov 32   ;;  %s903_s23 = smov 96  }
   0xe   :  { %736 = vmatmul.msk.f32.vlgmr.msra.gmra.mxu0 %vm60_vm0, %v925_v1  ;;  %v932_v3 = vperm.slane %v929_v2, 0  ;;  %v935_v7 = vld [vmem:[#allocation5 + $0x100] sm:$0xff]  ;;  %v946_v12 = vld [vmem:[#allocation5 + $0xd0] sm:$0xff]  ;;  %v960_v18 = vand.u32 127, %v199_v15  ;;  %v1027_v39 = vld [vmem:[#allocation3 + $0x8] sm:$0xff] }
   0xf   :  { %238 = vmatpush.msra.mxu2 %v935_v7  ;;  %293 = vmatpush.msra.mxu3 %v935_v7  ;;  %v941_v9 = vld [vmem:[#allocation5 + $0xe0] sm:$0xff]  ;;  %v973_v28 = vld [vmem:[#allocation5 + $0xb0] sm:$0xff] }
  0x10   :  { %458 = vmatpush.msrb.mxu0 %v935_v7  ;;  %v951_v13 = vld [vmem:[#allocation5 + $0xc0] sm:$0xff]  ;;  %vm201_vm3 = vcmp.lt.s32.totalorder %v960_v18, 96  ;;  %v979_v30 = vld [vmem:[#allocation5 + $0x90] sm:$0xff]  ;;  %vm202_vm6 = vcmp.lt.s32.totalorder %v960_v18, 32 }
  0x11   :  { %239 = vmatpush.msra.mxu2 %v937_v8  ;;  %294 = vmatpush.msra.mxu3 %v937_v8  ;;  %v975_v29 = vld [vmem:[#allocation5 + $0xa0] sm:$0xff]  ;;  %v992_v32 = vld [vmem:[#allocation5 + $0x70] sm:$0xff] }
  0x12   :  { %459 = vmatpush.msrb.mxu0 %v937_v8  ;;  %v984_v31 = vld [vmem:[#allocation5 + $0x80] sm:$0xff]  ;;  %v1002_v34 = vld [vmem:[#allocation5 + $0x50] sm:$0xff] }
  0x13   :  { %240 = vmatpush.msra.mxu2 %v941_v9  ;;  %295 = vmatpush.msra.mxu3 %v941_v9  ;;  %v997_v33 = vld [vmem:[#allocation5 + $0x60] sm:$0xff]  ;;  %v1009_v36 = vld [vmem:[#allocation5 + $0x30] sm:$0xff] }
  0x14   :  { %460 = vmatpush.msrb.mxu0 %v941_v9  ;;  %v1006_v35 = vld [vmem:[#allocation5 + $0x40] sm:$0xff]  ;;  %v1019_v38 = vld [vmem:[#allocation5 + $0x10] sm:$0xff] }
  0x15   :  { %241 = vmatpush.msra.mxu2 %v946_v12  ;;  %296 = vmatpush.msra.mxu3 %v946_v12  ;;  %v1014_v37 = vld [vmem:[#allocation5 + $0x20] sm:$0xff] }
  0x16   :  { %461 = vmatpush.msrb.mxu0 %v946_v12 }
  0x17   :  { %242 = vmatpush.msra.mxu2 %v951_v13  ;;  %297 = vmatpush.msra.mxu3 %v951_v13 }
  0x18   :  { %462 = vmatpush.msrb.mxu0 %v951_v13 }
  0x19   :  { %243 = vmatpush.msra.mxu2 %v973_v28  ;;  %298 = vmatpush.msra.mxu3 %v973_v28 }
  0x1a   :  { %463 = vmatpush.msrb.mxu0 %v973_v28 }
  0x1b   :  { %244 = vmatpush.msra.mxu2 %v975_v29  ;;  %299 = vmatpush.msra.mxu3 %v975_v29 }
  0x1c   :  { %464 = vmatpush.msrb.mxu0 %v975_v29 }
  0x1d   :  { %245 = vmatpush.msra.mxu2 %v979_v30  ;;  %300 = vmatpush.msra.mxu3 %v979_v30 }
  0x1e   :  { %465 = vmatpush.msrb.mxu0 %v979_v30 }
  0x1f   :  { %246 = vmatpush.msra.mxu2 %v984_v31  ;;  %301 = vmatpush.msra.mxu3 %v984_v31 }
  0x20   :  { %466 = vmatpush.msrb.mxu0 %v984_v31 }
  0x21   :  { %247 = vmatpush.msra.mxu2 %v992_v32  ;;  %302 = vmatpush.msra.mxu3 %v992_v32 }
  0x22   :  { %467 = vmatpush.msrb.mxu0 %v992_v32 }
  0x23   :  { %248 = vmatpush.msra.mxu2 %v997_v33  ;;  %303 = vmatpush.msra.mxu3 %v997_v33 }
  0x24   :  { %468 = vmatpush.msrb.mxu0 %v997_v33 }
  0x25   :  { %249 = vmatpush.msra.mxu2 %v1002_v34  ;;  %304 = vmatpush.msra.mxu3 %v1002_v34 }
  0x26   :  { %469 = vmatpush.msrb.mxu0 %v1002_v34 }
  0x27   :  { %250 = vmatpush.msra.mxu2 %v1006_v35  ;;  %305 = vmatpush.msra.mxu3 %v1006_v35 }
  0x28   :  { %470 = vmatpush.msrb.mxu0 %v1006_v35 }
  0x29   :  { %251 = vmatpush.msra.mxu2 %v1009_v36  ;;  %306 = vmatpush.msra.mxu3 %v1009_v36 }
  0x2a   :  { %471 = vmatpush.msrb.mxu0 %v1009_v36 }
  0x2b   :  { %252 = vmatpush.msra.mxu2 %v1014_v37  ;;  %307 = vmatpush.msra.mxu3 %v1014_v37 }
  0x2c   :  { %472 = vmatpush.msrb.mxu0 %v1014_v37 }
  0x2d   :  { %253 = vmatpush.msra.mxu2 %v1019_v38  ;;  %308 = vmatpush.msra.mxu3 %v1019_v38 }
  0x2e   :  { %737 = vmatmul.msk.f32.gmra.mxu0 %vm60_vm0, %v1027_v39 }
  0x2f   :  { %348 = vmatpush.msrb.mxu2 %v935_v7  ;;  %403 = vmatpush.msrb.mxu3 %v935_v7 }
  0x30   :  { %473 = vmatpush.msrb.mxu0 %v1019_v38 }
  0x31   :  { %349 = vmatpush.msrb.mxu2 %v937_v8  ;;  %404 = vmatpush.msrb.mxu3 %v937_v8 }
  0x33   :  { %350 = vmatpush.msrb.mxu2 %v941_v9  ;;  %405 = vmatpush.msrb.mxu3 %v941_v9 }
  0x35   :  { %351 = vmatpush.msrb.mxu2 %v946_v12  ;;  %406 = vmatpush.msrb.mxu3 %v946_v12 }
  0x37   :  { %352 = vmatpush.msrb.mxu2 %v951_v13  ;;  %407 = vmatpush.msrb.mxu3 %v951_v13 }
  0x39   :  { %353 = vmatpush.msrb.mxu2 %v973_v28  ;;  %408 = vmatpush.msrb.mxu3 %v973_v28 }
  0x3b   :  { %354 = vmatpush.msrb.mxu2 %v975_v29  ;;  %409 = vmatpush.msrb.mxu3 %v975_v29 }
  0x3d   :  { %355 = vmatpush.msrb.mxu2 %v979_v30  ;;  %410 = vmatpush.msrb.mxu3 %v979_v30 }
  0x3f   :  { %356 = vmatpush.msrb.mxu2 %v984_v31  ;;  %411 = vmatpush.msrb.mxu3 %v984_v31 }
  0x41   :  { %357 = vmatpush.msrb.mxu2 %v992_v32  ;;  %412 = vmatpush.msrb.mxu3 %v992_v32 }
  0x43   :  { %358 = vmatpush.msrb.mxu2 %v997_v33  ;;  %413 = vmatpush.msrb.mxu3 %v997_v33 }
  0x45   :  { %359 = vmatpush.msrb.mxu2 %v1002_v34  ;;  %414 = vmatpush.msrb.mxu3 %v1002_v34 }
  0x47   :  { %360 = vmatpush.msrb.mxu2 %v1006_v35  ;;  %415 = vmatpush.msrb.mxu3 %v1006_v35 }
  0x49   :  { %361 = vmatpush.msrb.mxu2 %v1009_v36  ;;  %416 = vmatpush.msrb.mxu3 %v1009_v36 }
  0x4b   :  { %362 = vmatpush.msrb.mxu2 %v1014_v37  ;;  %417 = vmatpush.msrb.mxu3 %v1014_v37 }
  0x4d   :  { %363 = vmatpush.msrb.mxu2 %v1019_v38  ;;  %418 = vmatpush.msrb.mxu3 %v1019_v38 }
  0x8b   :  { %v102_v4 = vpop.f32.mrf.mxu0 }
  0x8c   :  { %v103_v5 = vadd.f32 %v102_v4, %v932_v3 }
  0x8e   :  { %v752_v6 = vmul.f32 -1.442695, %v103_v5 }
  0x90   :  { %771 = vpow2.f32 %v752_v6 }
  0x96   :  { %v772_v10 = vpop.eup %771 }
  0x97   :  { %v207_v11 = vadd.f32 1.0, %v772_v10  ;;  %v1093_v10 = vld [vmem:[#allocation3 + $0x10] sm:$0xff] }
  0x98   :  { %738 = vmatmul.msk.f32.gmra.mxu0 %vm60_vm0, %v1093_v10 }
  0x99   :  { %773 = vrcp.f32 %v207_v11  ;;  %v219_v19 = vand.u32 2147483648, %v207_v11  ;;  %v217_v21 = vand.u32 2147483647, %v207_v11  ;;  %vm213_vm2 = vweird.f32 %v207_v11 }
  0x9a   :  { %775 = vtanh.f32 %v103_v5 }
  0x9b   :  { %v220_v23 = vor.u32 1.1754944e-38, %v219_v19  ;;  %vm218_vm5 = vcmp.eq.f32.partialorder %v217_v21, 8.507059e+37 }
  0x9f   :  { %v774_v14 = vpop.eup %773 }
  0xa0   :  { %v209_v16 = vmul.f32 %v774_v14, %v207_v11  ;;  %vm214_vm1 = vweird.f32 %v774_v14  ;;  %v776_v25 = vpop.eup %775 }
  0xa1   :  { %vm215_vm4 = vmor %vm213_vm2, %vm214_vm1 }
  0xa2   :  { %v210_v17 = vsub.f32 1.0, %v209_v16 }
  0xa4   :  { %v211_v20 = vmul.f32 %v774_v14, %v210_v17 }
  0xa6   :  { %v212_v22 = vadd.f32 %v774_v14, %v211_v20 }
  0xa8   :  { %v216_v24 = vsel %vm215_vm4, %v774_v14, %v212_v22 }
  0xa9   :  { %v221_v26 = vsel %vm218_vm5, %v220_v23, %v216_v24 }
  0xaa   :  { %v965_v27 = vsel %vm201_vm3, %v221_v26, %v776_v25 }
  0xab   :  { %233 = vrot.lane.b32.xlu1 %v965_v27, %s901_s0  ;;  %225 = vrot.lane.b32.xlu0 %v965_v27, %s902_s1  ;;  %v105_v49 = vpop.f32.mrf.mxu0 }
  0xac   :  { %v106_v50 = vadd.f32 %v105_v49, %v932_v3 }
  0xb3   :  { %228 = vrot.lane.b32.xlu0 %v965_v27, %s903_s23 }
 0x115   :  { %v108_v23 = vpop.f32.mrf.mxu0 }
 0x116   :  { %v109_v24 = vadd.f32 %v108_v23, %v932_v3 }
 0x11d   :  { %v226_v40 = vpop.permute.xlu0 %225  ;;  %v234_v47 = vpop.permute.xlu1 %233 }
 0x11e   :  { %v227_v42 = vmul.f32 %v226_v40, %v965_v27 }
 0x125   :  { %v229_v41 = vpop.permute.xlu0 %228 }
 0x126   :  { %v230_v43 = vmul.f32 0.0, %v229_v41 }
 0x128   :  { %v231_v44 = vadd.f32 %v230_v43, %v227_v42 }
 0x12a   :  { %v1058_v45 = vsel %vm202_vm6, %v231_v44, 0.0 }
 0x12b   :  { %777 = vtanh.f32 %v1058_v45 }
 0x131   :  { %v778_v46 = vpop.eup %777 }
 0x132   :  { %v236_v48 = vmul.f32 %v778_v46, %v234_v47 }
 0x134   :  { %254 = vmatmul.f32.vlgmr.msra.gmra.mxu2 %v236_v48 }
 0x135   :  { %568 = vmatpush.msra.mxu2 %v935_v7 }
 0x137   :  { %569 = vmatpush.msra.mxu2 %v937_v8 }
 0x139   :  { %570 = vmatpush.msra.mxu2 %v941_v9 }
 0x13b   :  { %571 = vmatpush.msra.mxu2 %v946_v12 }
 0x13d   :  { %572 = vmatpush.msra.mxu2 %v951_v13 }
 0x13f   :  { %573 = vmatpush.msra.mxu2 %v973_v28 }
 0x141   :  { %574 = vmatpush.msra.mxu2 %v975_v29 }
 0x143   :  { %575 = vmatpush.msra.mxu2 %v979_v30 }
 0x145   :  { %576 = vmatpush.msra.mxu2 %v984_v31 }
 0x147   :  { %577 = vmatpush.msra.mxu2 %v992_v32 }
 0x149   :  { %578 = vmatpush.msra.mxu2 %v997_v33 }
 0x14b   :  { %579 = vmatpush.msra.mxu2 %v1002_v34 }
 0x14d   :  { %580 = vmatpush.msra.mxu2 %v1006_v35 }
 0x14f   :  { %581 = vmatpush.msra.mxu2 %v1009_v36 }
 0x151   :  { %582 = vmatpush.msra.mxu2 %v1014_v37 }
 0x153   :  { %583 = vmatpush.msra.mxu2 %v1019_v38 }
 0x1b7   :  { %v255_v51 = vpop.f32.mrf.mxu2 }
 0x1b8   :  { %v258_v52 = vadd.f32 %v255_v51, %v106_v50 }
 0x1ba   :  { %v753_v53 = vmul.f32 -1.442695, %v258_v52 }
 0x1bc   :  { %779 = vpow2.f32 %v753_v53 }
 0x1c2   :  { %v780_v54 = vpop.eup %779 }
 0x1c3   :  { %v262_v55 = vadd.f32 1.0, %v780_v54  ;;  %v1106_v54 = vld [vmem:[#allocation3 + $0x18] sm:$0xff] }
 0x1c4   :  { %739 = vmatmul.msk.f32.gmra.mxu0 %vm60_vm0, %v1106_v54 }
 0x1c5   :  { %781 = vrcp.f32 %v262_v55  ;;  %v274_v59 = vand.u32 2147483648, %v262_v55  ;;  %v272_v61 = vand.u32 2147483647, %v262_v55  ;;  %vm268_vm8 = vweird.f32 %v262_v55 }
 0x1c6   :  { %783 = vtanh.f32 %v258_v52 }
 0x1c7   :  { %v275_v63 = vor.u32 1.1754944e-38, %v274_v59  ;;  %vm273_vm10 = vcmp.eq.f32.partialorder %v272_v61, 8.507059e+37 }
 0x1cb   :  { %v782_v56 = vpop.eup %781 }
 0x1cc   :  { %v264_v57 = vmul.f32 %v782_v56, %v262_v55  ;;  %vm269_vm7 = vweird.f32 %v782_v56  ;;  %v784_v4 = vpop.eup %783 }
 0x1cd   :  { %vm270_vm9 = vmor %vm268_vm8, %vm269_vm7 }
 0x1ce   :  { %v265_v58 = vsub.f32 1.0, %v264_v57 }
 0x1d0   :  { %v266_v60 = vmul.f32 %v782_v56, %v265_v58 }
 0x1d2   :  { %v267_v62 = vadd.f32 %v782_v56, %v266_v60 }
 0x1d4   :  { %v271_v0 = vsel %vm270_vm9, %v782_v56, %v267_v62 }
 0x1d5   :  { %v276_v5 = vsel %vm273_vm10, %v275_v63, %v271_v0 }
 0x1d6   :  { %v279_v6 = vsel %vm201_vm3, %v276_v5, %v784_v4 }
 0x1d7   :  { %283 = vrot.lane.b32.xlu2 %v279_v6, %s903_s23  ;;  %280 = vrot.lane.b32.xlu1 %v279_v6, %s902_s1 }
 0x1df   :  { %288 = vrot.lane.b32.xlu2 %v279_v6, %s901_s0 }
 0x231   :  { %v284_v11 = vpop.permute.xlu2 %283 }
 0x232   :  { %v285_v15 = vmul.f32 %v284_v11, %v1058_v45 }
 0x239   :  { %v289_v21 = vpop.permute.xlu2 %288 }
 0x241   :  { %v111_v0 = vpop.f32.mrf.mxu0 }
 0x242   :  { %v112_v4 = vadd.f32 %v111_v0, %v932_v3 }
 0x249   :  { %v281_v14 = vpop.permute.xlu1 %280 }
 0x24a   :  { %v282_v16 = vmul.f32 %v281_v14, %v279_v6 }
 0x24c   :  { %v286_v17 = vadd.f32 %v285_v15, %v282_v16 }
 0x24e   :  { %v287_v19 = vsel %vm202_vm6, %v286_v17, 0.0 }
 0x24f   :  { %785 = vtanh.f32 %v287_v19 }
 0x255   :  { %v786_v20 = vpop.eup %785 }
 0x256   :  { %v291_v22 = vmul.f32 %v786_v20, %v289_v21 }
 0x258   :  { %309 = vmatmul.f32.vlgmr.msra.gmra.mxu3 %v291_v22 }
 0x2db   :  { %v310_v25 = vpop.f32.mrf.mxu3 }
 0x2dc   :  { %v313_v26 = vadd.f32 %v310_v25, %v109_v24 }
 0x2de   :  { %v754_v27 = vmul.f32 -1.442695, %v313_v26 }
 0x2e0   :  { %787 = vpow2.f32 %v754_v27 }
 0x2e6   :  { %v788_v40 = vpop.eup %787 }
 0x2e7   :  { %v317_v41 = vadd.f32 1.0, %v788_v40 }
 0x2e9   :  { %789 = vrcp.f32 %v317_v41  ;;  %v329_v45 = vand.u32 2147483648, %v317_v41  ;;  %v327_v47 = vand.u32 2147483647, %v317_v41  ;;  %vm323_vm12 = vweird.f32 %v317_v41 }
 0x2ea   :  { %791 = vtanh.f32 %v313_v26 }
 0x2eb   :  { %v330_v49 = vor.u32 1.1754944e-38, %v329_v45  ;;  %vm328_vm14 = vcmp.eq.f32.partialorder %v327_v47, 8.507059e+37 }
 0x2ef   :  { %v790_v42 = vpop.eup %789 }
 0x2f0   :  { %v319_v43 = vmul.f32 %v790_v42, %v317_v41  ;;  %vm324_vm11 = vweird.f32 %v790_v42  ;;  %v792_v51 = vpop.eup %791  ;;  %v1118_v41 = vld [vmem:[#allocation3 + $0x20] sm:$0xff] }
 0x2f1   :  { %vm325_vm13 = vmor %vm323_vm12, %vm324_vm11  ;;  %740 = vmatmul.msk.f32.gmra.mxu0 %vm60_vm0, %v1118_v41 }
 0x2f2   :  { %v320_v44 = vsub.f32 1.0, %v319_v43 }
 0x2f4   :  { %v321_v46 = vmul.f32 %v790_v42, %v320_v44 }
 0x2f6   :  { %v322_v48 = vadd.f32 %v790_v42, %v321_v46 }
 0x2f8   :  { %v326_v50 = vsel %vm325_vm13, %v790_v42, %v322_v48 }
 0x2f9   :  { %v331_v52 = vsel %vm328_vm14, %v330_v49, %v326_v50 }
 0x2fa   :  { %v334_v53 = vsel %vm201_vm3, %v331_v52, %v792_v51 }
 0x2fb   :  { %343 = vrot.lane.b32.xlu2 %v334_v53, %s901_s0  ;;  %338 = vrot.lane.b32.xlu1 %v334_v53, %s903_s23 }
 0x2fc   :  { %335 = vrot.lane.b32.xlu0 %v334_v53, %s902_s1 }
 0x355   :  { %v344_v62 = vpop.permute.xlu2 %343 }
 0x36d   :  { %v339_v55 = vpop.permute.xlu1 %338 }
 0x36e   :  { %v340_v56 = vmul.f32 %v339_v55, %v287_v19  ;;  %v336_v57 = vpop.permute.xlu0 %335  ;;  %v114_v51 = vpop.f32.mrf.mxu0 }
 0x36f   :  { %v337_v58 = vmul.f32 %v336_v57, %v334_v53  ;;  %v115_v52 = vadd.f32 %v114_v51, %v932_v3 }
 0x371   :  { %v341_v59 = vadd.f32 %v340_v56, %v337_v58 }
 0x373   :  { %v342_v60 = vsel %vm202_vm6, %v341_v59, 0.0 }
 0x374   :  { %793 = vtanh.f32 %v342_v60 }
 0x37a   :  { %v794_v61 = vpop.eup %793 }
 0x37b   :  { %v346_v63 = vmul.f32 %v794_v61, %v344_v62 }
 0x37d   :  { %364 = vmatmul.f32.vlgmr.msrb.gmra.mxu2 %v346_v63 }
 0x400   :  { %v365_v5 = vpop.f32.mrf.mxu2 }
 0x401   :  { %v368_v6 = vadd.f32 %v365_v5, %v112_v4 }
 0x403   :  { %v755_v11 = vmul.f32 -1.442695, %v368_v6 }
 0x405   :  { %795 = vpow2.f32 %v755_v11 }
 0x40b   :  { %v796_v14 = vpop.eup %795 }
 0x40c   :  { %v372_v15 = vadd.f32 1.0, %v796_v14 }
 0x40e   :  { %797 = vrcp.f32 %v372_v15  ;;  %v384_v20 = vand.u32 2147483648, %v372_v15  ;;  %v382_v22 = vand.u32 2147483647, %v372_v15  ;;  %vm378_vm1 = vweird.f32 %v372_v15 }
 0x40f   :  { %799 = vtanh.f32 %v368_v6 }
 0x410   :  { %v385_v24 = vor.u32 1.1754944e-38, %v384_v20  ;;  %vm383_vm4 = vcmp.eq.f32.partialorder %v382_v22, 8.507059e+37 }
 0x414   :  { %v798_v16 = vpop.eup %797 }
 0x415   :  { %v374_v17 = vmul.f32 %v798_v16, %v372_v15  ;;  %vm379_vm15 = vweird.f32 %v798_v16  ;;  %v800_v26 = vpop.eup %799 }
 0x416   :  { %vm380_vm2 = vmor %vm378_vm1, %vm379_vm15 }
 0x417   :  { %v375_v19 = vsub.f32 1.0, %v374_v17  ;;  %v1134_v17 = vld [vmem:[#allocation3 + $0x30] sm:$0xff] }
 0x419   :  { %v376_v21 = vmul.f32 %v798_v16, %v375_v19 }
 0x41b   :  { %v377_v23 = vadd.f32 %v798_v16, %v376_v21 }
 0x41d   :  { %v381_v25 = vsel %vm380_vm2, %v798_v16, %v377_v23  ;;  %v1130_v16 = vld [vmem:[#allocation3 + $0x28] sm:$0xff] }
 0x41e   :  { %v386_v27 = vsel %vm383_vm4, %v385_v24, %v381_v25  ;;  %741 = vmatmul.msk.f32.gmra.mxu0 %vm60_vm0, %v1130_v16 }
 0x41f   :  { %v389_v40 = vsel %vm201_vm3, %v386_v27, %v800_v26 }
 0x420   :  { %398 = vrot.lane.b32.xlu2 %v389_v40, %s901_s0  ;;  %393 = vrot.lane.b32.xlu1 %v389_v40, %s903_s23 }
 0x421   :  { %390 = vrot.lane.b32.xlu0 %v389_v40, %s902_s1 }
 0x426   :  { %742 = vmatmul.msk.f32.gmra.mxu0 %vm60_vm0, %v1134_v17 }
 0x47a   :  { %v399_v49 = vpop.permute.xlu2 %398 }
 0x492   :  { %v394_v42 = vpop.permute.xlu1 %393 }
 0x493   :  { %v395_v43 = vmul.f32 %v394_v42, %v342_v60  ;;  %v391_v44 = vpop.permute.xlu0 %390 }
 0x494   :  { %v392_v45 = vmul.f32 %v391_v44, %v389_v40 }
 0x496   :  { %v396_v46 = vadd.f32 %v395_v43, %v392_v45 }
 0x498   :  { %v397_v47 = vsel %vm202_vm6, %v396_v46, 0.0  ;;  %v50_v46 = vld [vmem:[#allocation3 + $0x38] sm:$0xff] }
 0x499   :  { %801 = vtanh.f32 %v397_v47  ;;  %743 = vmatmul.msk.f32.vlgmr.msra.gmra.mxu1 %vm60_vm0, %v50_v46 }
 0x49b   :  { %v117_v40 = vpop.f32.mrf.mxu0 }
 0x49c   :  { %v118_v43 = vadd.f32 %v117_v40, %v932_v3 }
 0x49f   :  { %v802_v48 = vpop.eup %801 }
 0x4a0   :  { %v401_v50 = vmul.f32 %v802_v48, %v399_v49 }
 0x4a2   :  { %419 = vmatmul.f32.vlgmr.msrb.gmra.mxu3 %v401_v50 }
 0x4a3   :  { %v1143_v42 = vpop.f32.mrf.mxu0 }
 0x525   :  { %v420_v53 = vpop.f32.mrf.mxu3 }
 0x526   :  { %v423_v55 = vadd.f32 %v420_v53, %v115_v52 }
 0x528   :  { %v756_v56 = vmul.f32 -1.442695, %v423_v55 }
 0x52a   :  { %803 = vpow2.f32 %v756_v56 }
 0x530   :  { %v804_v57 = vpop.eup %803 }
 0x531   :  { %v427_v58 = vadd.f32 1.0, %v804_v57 }
 0x533   :  { %805 = vrcp.f32 %v427_v58  ;;  %v439_v62 = vand.u32 2147483648, %v427_v58  ;;  %v437_v0 = vand.u32 2147483647, %v427_v58  ;;  %vm433_vm7 = vweird.f32 %v427_v58 }
 0x534   :  { %807 = vtanh.f32 %v423_v55 }
 0x535   :  { %v440_v5 = vor.u32 1.1754944e-38, %v439_v62  ;;  %vm438_vm9 = vcmp.eq.f32.partialorder %v437_v0, 8.507059e+37  ;;  %v121_v0 = vadd.f32 %v1143_v42, %v932_v3 }
 0x539   :  { %v806_v59 = vpop.eup %805 }
 0x53a   :  { %v429_v60 = vmul.f32 %v806_v59, %v427_v58  ;;  %vm434_vm5 = vweird.f32 %v806_v59  ;;  %v808_v11 = vpop.eup %807 }
 0x53b   :  { %vm435_vm8 = vmor %vm433_vm7, %vm434_vm5 }
 0x53c   :  { %v430_v61 = vsub.f32 1.0, %v429_v60  ;;  %v57_v60 = vperm.slane %v929_v2, 1 }
 0x53e   :  { %v431_v63 = vmul.f32 %v806_v59, %v430_v61 }
 0x540   :  { %v432_v4 = vadd.f32 %v806_v59, %v431_v63 }
 0x542   :  { %v436_v6 = vsel %vm435_vm8, %v806_v59, %v432_v4 }
 0x543   :  { %v441_v14 = vsel %vm438_vm9, %v440_v5, %v436_v6 }
 0x544   :  { %v444_v15 = vsel %vm201_vm3, %v441_v14, %v808_v11 }
 0x545   :  { %453 = vrot.lane.b32.xlu2 %v444_v15, %s901_s0  ;;  %448 = vrot.lane.b32.xlu1 %v444_v15, %s903_s23 }
 0x546   :  { %445 = vrot.lane.b32.xlu0 %v444_v15, %s902_s1 }
 0x59f   :  { %v454_v26 = vpop.permute.xlu2 %453 }
 0x5b7   :  { %v449_v19 = vpop.permute.xlu1 %448 }
 0x5b8   :  { %v450_v20 = vmul.f32 %v449_v19, %v397_v47  ;;  %v446_v21 = vpop.permute.xlu0 %445  ;;  %v52_v47 = vld [vmem:[#allocation5 + $0x8] sm:$0xff] }
 0x5b9   :  { %v447_v22 = vmul.f32 %v446_v21, %v444_v15  ;;  %141 = vmatpush.msrb.mxu1 %v52_v47 }
 0x5ba   :  { %744 = vmatmul.msk.f32.vlgmr.msrb.gmra.mxu1 %vm60_vm0, %v925_v1 }
 0x5bb   :  { %v451_v23 = vadd.f32 %v450_v20, %v447_v22  ;;  %513 = vmatpush.msra.mxu1 %v935_v7 }
 0x5bd   :  { %v1140_v24 = vsel %vm202_vm6, %v451_v23, 0.0  ;;  %514 = vmatpush.msra.mxu1 %v937_v8 }
 0x5be   :  { %809 = vtanh.f32 %v1140_v24 }
 0x5bf   :  { %515 = vmatpush.msra.mxu1 %v941_v9 }
 0x5c1   :  { %516 = vmatpush.msra.mxu1 %v946_v12 }
 0x5c2   :  { %745 = vmatmul.msk.f32.gmra.mxu1 %vm60_vm0, %v1027_v39 }
 0x5c3   :  { %517 = vmatpush.msra.mxu1 %v951_v13 }
 0x5c4   :  { %v810_v25 = vpop.eup %809 }
 0x5c5   :  { %v456_v27 = vmul.f32 %v810_v25, %v454_v26  ;;  %518 = vmatpush.msra.mxu1 %v973_v28 }
 0x5c7   :  { %474 = vmatmul.f32.vlgmr.msrb.gmra.mxu0 %v456_v27  ;;  %519 = vmatpush.msra.mxu1 %v975_v29 }
 0x5c9   :  { %520 = vmatpush.msra.mxu1 %v979_v30 }
 0x5ca   :  { %746 = vmatmul.msk.f32.gmra.mxu1 %vm60_vm0, %v1093_v10 }
 0x5cb   :  { %521 = vmatpush.msra.mxu1 %v984_v31 }
 0x5cd   :  { %522 = vmatpush.msra.mxu1 %v992_v32 }
 0x5cf   :  { %523 = vmatpush.msra.mxu1 %v997_v33  ;;  %v1183_v33 = vpop.f32.mrf.mxu1 }
 0x5d1   :  { %524 = vmatpush.msra.mxu1 %v1002_v34 }
 0x5d2   :  { %747 = vmatmul.msk.f32.gmra.mxu1 %vm60_vm0, %v1106_v54 }
 0x5d3   :  { %525 = vmatpush.msra.mxu1 %v1006_v35 }
 0x5d5   :  { %526 = vmatpush.msra.mxu1 %v1009_v36 }
 0x5d7   :  { %527 = vmatpush.msra.mxu1 %v1014_v37 }
 0x5d9   :  { %528 = vmatpush.msra.mxu1 %v1019_v38 }
 0x5da   :  { %748 = vmatmul.msk.f32.gmra.mxu1 %vm60_vm0, %v1118_v41 }
 0x5e2   :  { %749 = vmatmul.msk.f32.gmra.mxu1 %vm60_vm0, %v1130_v16 }
 0x5ea   :  { %750 = vmatmul.msk.f32.gmra.mxu1 %vm60_vm0, %v1134_v17 }
 0x5f2   :  { %751 = vmatmul.msk.f32.gmra.mxu1 %vm60_vm0, %v50_v46 }
 0x637   :  { %v143_v34 = vpop.f32.mrf.mxu1 }
 0x638   :  { %v124_v34 = vadd.f32 %v1183_v33, %v932_v3  ;;  %v667_v3 = vld [vmem:[#allocation5 + $0x1d0] sm:$0xff] }
 0x639   :  { %v683_v33 = vld [vmem:[#allocation5 + $0x2d0] sm:$0xff] }
 0x63f   :  { %v146_v36 = vpop.f32.mrf.mxu1 }
 0x644   :  { %v475_v44 = vpop.f32.mrf.mxu0 }
 0x645   :  { %v478_v45 = vadd.f32 %v475_v44, %v118_v43 }
 0x647   :  { %v757_v48 = vmul.f32 -1.442695, %v478_v45  ;;  %v149_v51 = vpop.f32.mrf.mxu1 }
 0x648   :  { %v686_v51 = vld [vmem:[#allocation5 + $0x300] sm:$0xff] }
 0x649   :  { %811 = vpow2.f32 %v757_v48 }
 0x64f   :  { %v812_v49 = vpop.eup %811  ;;  %v152_v56 = vpop.f32.mrf.mxu1 }
 0x650   :  { %v482_v50 = vadd.f32 1.0, %v812_v49  ;;  %v668_v56 = vld [vmem:[#allocation5 + $0x1e0] sm:$0xff] }
 0x652   :  { %813 = vrcp.f32 %v482_v50  ;;  %v494_v9 = vand.u32 2147483648, %v482_v50  ;;  %v492_v13 = vand.u32 2147483647, %v482_v50  ;;  %vm488_vm11 = vweird.f32 %v482_v50 }
 0x653   :  { %815 = vtanh.f32 %v478_v45 }
 0x654   :  { %v495_v29 = vor.u32 1.1754944e-38, %v494_v9  ;;  %vm493_vm13 = vcmp.eq.f32.partialorder %v492_v13, 8.507059e+37 }
 0x657   :  { %v155_v57 = vpop.f32.mrf.mxu1 }
 0x658   :  { %v814_v7 = vpop.eup %813  ;;  %v684_v57 = vld [vmem:[#allocation5 + $0x2e0] sm:$0xff] }
 0x659   :  { %v484_v8 = vmul.f32 %v814_v7, %v482_v50  ;;  %vm489_vm10 = vweird.f32 %v814_v7  ;;  %v816_v31 = vpop.eup %815 }
 0x65a   :  { %vm490_vm12 = vmor %vm488_vm11, %vm489_vm10 }
 0x65b   :  { %v485_v1 = vsub.f32 1.0, %v484_v8 }
 0x65d   :  { %v486_v12 = vmul.f32 %v814_v7, %v485_v1 }
 0x65f   :  { %v487_v28 = vadd.f32 %v814_v7, %v486_v12  ;;  %v158_v58 = vpop.f32.mrf.mxu1 }
 0x660   :  { %v666_v58 = vld [vmem:[#allocation5 + $0x1c0] sm:$0xff] }
 0x661   :  { %v491_v30 = vsel %vm490_vm12, %v814_v7, %v487_v28 }
 0x662   :  { %v496_v32 = vsel %vm493_vm13, %v495_v29, %v491_v30 }
 0x663   :  { %v499_v39 = vsel %vm201_vm3, %v496_v32, %v816_v31 }
 0x664   :  { %508 = vrot.lane.b32.xlu2 %v499_v39, %s901_s0  ;;  %503 = vrot.lane.b32.xlu1 %v499_v39, %s903_s23 }
 0x665   :  { %500 = vrot.lane.b32.xlu0 %v499_v39, %s902_s1 }
 0x667   :  { %v161_v59 = vpop.f32.mrf.mxu1 }
 0x668   :  { %v665_v59 = vld [vmem:[#allocation5 + $0x1b0] sm:$0xff] }
 0x66f   :  { %v164_v61 = vpop.f32.mrf.mxu1 }
 0x670   :  { %v165_v62 = vadd.f32 %v164_v61, %v57_v60  ;;  %v664_v61 = vld [vmem:[#allocation5 + $0x1a0] sm:$0xff] }
 0x672   :  { %v760_v63 = vmul.f32 -1.442695, %v165_v62 }
 0x6be   :  { %v509_v53 = vpop.permute.xlu2 %508 }
 0x6d6   :  { %v504_v35 = vpop.permute.xlu1 %503 }
 0x6d7   :  { %v505_v37 = vmul.f32 %v504_v35, %v1140_v24  ;;  %v501_v10 = vpop.permute.xlu0 %500 }
 0x6d8   :  { %v502_v38 = vmul.f32 %v501_v10, %v499_v39  ;;  %v671_v10 = vld [vmem:[#allocation5 + $0x210] sm:$0xff] }
 0x6d9   :  { %689 = vmatpush.msra.mxu3 %v671_v10 }
 0x6da   :  { %v506_v54 = vadd.f32 %v505_v37, %v502_v38  ;;  %v670_v38 = vld [vmem:[#allocation5 + $0x200] sm:$0xff] }
 0x6db   :  { %690 = vmatpush.msra.mxu3 %v670_v38 }
 0x6dc   :  { %v1188_v41 = vsel %vm202_vm6, %v506_v54, 0.0  ;;  %v687_v54 = vld [vmem:[#allocation5 + $0x310] sm:$0xff] }
 0x6dd   :  { %817 = vtanh.f32 %v1188_v41  ;;  %709 = vmatpush.msra.mxu0 %v687_v54  ;;  %v688_v54 = vld [vmem:[#allocation5 + $0x320] ss:$0 sm:$0xff] }
 0x6de   :  { %819 = vpow2.f32 %v760_v63  ;;  %v663_v63 = vld [vmem:[#allocation5 + $0x190] sm:$0xff] }
 0x6df   :  { %710 = vmatpush.msra.mxu0 %v686_v51 }
 0x6e3   :  { %v818_v52 = vpop.eup %817 }
 0x6e4   :  { %v511_v55 = vmul.f32 %v818_v52, %v509_v53  ;;  %v820_v5 = vpop.eup %819  ;;  %v685_v53 = vld [vmem:[#allocation5 + $0x2f0] sm:$0xff] }
 0x6e5   :  { %v626_v14 = vadd.f32 1.0, %v820_v5  ;;  %711 = vmatpush.msra.mxu0 %v685_v53 }
 0x6e6   :  { %529 = vmatmul.f32.vlgmr.msra.gmra.mxu1 %v511_v55 }
 0x6e7   :  { %vm632_vm15 = vweird.f32 %v626_v14  ;;  %v638_v42 = vand.u32 2147483648, %v626_v14  ;;  %v636_v45 = vand.u32 2147483647, %v626_v14  ;;  %712 = vmatpush.msra.mxu0 %v684_v57 }
 0x6e9   :  { %v639_v49 = vor.u32 1.1754944e-38, %v638_v42  ;;  %vm637_vm7 = vcmp.eq.f32.partialorder %v636_v45, 8.507059e+37  ;;  %713 = vmatpush.msra.mxu0 %v683_v33  ;;  %v657_v42 = vld [vmem:[#allocation5 + $0x130] sm:$0xff]  ;;  %v676_v45 = vld [vmem:[#allocation5 + $0x260] sm:$0xff] }
 0x763   :  { %v530_v4 = vpop.f32.mrf.mxu1 }
 0x764   :  { %v533_v6 = vadd.f32 %v530_v4, %v121_v0 }
 0x766   :  { %v758_v11 = vmul.f32 -1.442695, %v533_v6 }
 0x768   :  { %821 = vpow2.f32 %v758_v11 }
 0x769   :  { %823 = vrcp.f32 %v626_v14 }
 0x76e   :  { %v822_v15 = vpop.eup %821 }
 0x76f   :  { %v537_v16 = vadd.f32 1.0, %v822_v15  ;;  %v824_v17 = vpop.eup %823 }
 0x770   :  { %v628_v19 = vmul.f32 %v824_v17, %v626_v14  ;;  %vm633_vm1 = vweird.f32 %v824_v17 }
 0x771   :  { %825 = vrcp.f32 %v537_v16  ;;  %v549_v23 = vand.u32 2147483648, %v537_v16  ;;  %v547_v25 = vand.u32 2147483647, %v537_v16  ;;  %vm543_vm14 = vweird.f32 %v537_v16  ;;  %vm634_vm5 = vmor %vm632_vm15, %vm633_vm1 }
 0x772   :  { %v629_v21 = vsub.f32 1.0, %v628_v19  ;;  %827 = vtanh.f32 %v533_v6 }
 0x773   :  { %v550_v40 = vor.u32 1.1754944e-38, %v549_v23  ;;  %vm548_vm4 = vcmp.eq.f32.partialorder %v547_v25, 8.507059e+37  ;;  %829 = vtanh.f32 %v165_v62  ;;  %v660_v23 = vld [vmem:[#allocation5 + $0x160] sm:$0xff]  ;;  %v659_v25 = vld [vmem:[#allocation5 + $0x150] sm:$0xff] }
 0x774   :  { %v630_v26 = vmul.f32 %v824_v17, %v629_v21  ;;  %v661_v21 = vld [vmem:[#allocation5 + $0x170] sm:$0xff] }
 0x776   :  { %v631_v44 = vadd.f32 %v824_v17, %v630_v26  ;;  %v679_v26 = vld [vmem:[#allocation5 + $0x290] sm:$0xff] }
 0x777   :  { %v826_v2 = vpop.eup %825 }
 0x778   :  { %v539_v20 = vmul.f32 %v826_v2, %v537_v16  ;;  %vm544_vm0 = vweird.f32 %v826_v2  ;;  %v828_v46 = vpop.eup %827  ;;  %v635_v50 = vsel %vm634_vm5, %v824_v17, %v631_v44  ;;  %v656_v44 = vld [vmem:[#allocation5 + $0x120] sm:$0xff] }
 0x779   :  { %vm545_vm2 = vmor %vm543_vm14, %vm544_vm0  ;;  %v830_v7 = vpop.eup %829  ;;  %v640_v8 = vsel %vm637_vm7, %v639_v49, %v635_v50  ;;  %v672_v49 = vld [vmem:[#allocation5 + $0x220] sm:$0xff] }
 0x77a   :  { %v540_v22 = vsub.f32 1.0, %v539_v20  ;;  %v1201_v1 = vsel %vm201_vm3, %v640_v8, %v830_v7  ;;  %v682_v20 = vld [vmem:[#allocation5 + $0x2c0] sm:$0xff] }
 0x77b   :  { %714 = vmatpush.msra.mxu0 %v682_v20 }
 0x77c   :  { %v541_v24 = vmul.f32 %v826_v2, %v540_v22  ;;  %v681_v22 = vld [vmem:[#allocation5 + $0x2b0] sm:$0xff] }
 0x77d   :  { %715 = vmatpush.msra.mxu0 %v681_v22 }
 0x77e   :  { %v542_v27 = vadd.f32 %v826_v2, %v541_v24  ;;  %v680_v24 = vld [vmem:[#allocation5 + $0x2a0] sm:$0xff] }
 0x77f   :  { %716 = vmatpush.msra.mxu0 %v680_v24 }
 0x780   :  { %v546_v43 = vsel %vm545_vm2, %v826_v2, %v542_v27  ;;  %v662_v2 = vld [vmem:[#allocation5 + $0x180] sm:$0xff] }
 0x781   :  { %v551_v47 = vsel %vm548_vm4, %v550_v40, %v546_v43  ;;  %717 = vmatpush.msra.mxu0 %v679_v26  ;;  %v658_v27 = vld [vmem:[#allocation5 + $0x140] sm:$0xff]  ;;  %v677_v43 = vld [vmem:[#allocation5 + $0x270] sm:$0xff] }
 0x782   :  { %v554_v48 = vsel %vm201_vm3, %v551_v47, %v828_v46  ;;  %v678_v40 = vld [vmem:[#allocation5 + $0x280] sm:$0xff]  ;;  %v675_v46 = vld [vmem:[#allocation5 + $0x250] sm:$0xff] }
 0x783   :  { %563 = vrot.lane.b32.xlu2 %v554_v48, %s901_s0  ;;  %558 = vrot.lane.b32.xlu1 %v554_v48, %s903_s23  ;;  %v674_v47 = vld [vmem:[#allocation5 + $0x240] sm:$0xff] }
 0x784   :  { %555 = vrot.lane.b32.xlu0 %v554_v48, %s902_s1  ;;  %718 = vmatpush.msra.mxu0 %v678_v40 }
 0x786   :  { %719 = vmatpush.msra.mxu0 %v677_v43 }
 0x788   :  { %720 = vmatpush.msra.mxu0 %v676_v45 }
 0x78a   :  { %721 = vmatpush.msra.mxu0 %v675_v46 }
 0x78b   :  { %644 = vrot.lane.b32.xlu2 %v1201_v1, %s902_s1 }
 0x78c   :  { %722 = vmatpush.msra.mxu0 %v674_v47 }
 0x793   :  { %652 = vrot.lane.b32.xlu2 %v1201_v1, %s901_s0 }
 0x7dd   :  { %v564_v32 = vpop.permute.xlu2 %563 }
 0x7f5   :  { %v559_v9 = vpop.permute.xlu1 %558 }
 0x7f6   :  { %v560_v12 = vmul.f32 %v559_v9, %v1188_v41  ;;  %v556_v13 = vpop.permute.xlu0 %555  ;;  %v669_v41 = vld [vmem:[#allocation5 + $0x1f0] sm:$0xff] }
 0x7f7   :  { %v557_v28 = vmul.f32 %v556_v13, %v554_v48  ;;  %691 = vmatpush.msra.mxu3 %v669_v41  ;;  %v673_v48 = vld [vmem:[#allocation5 + $0x230] sm:$0xff] }
 0x7f8   :  { %723 = vmatpush.msra.mxu0 %v673_v48 }
 0x7f9   :  { %v561_v29 = vadd.f32 %v560_v12, %v557_v28  ;;  %692 = vmatpush.msra.mxu3 %v668_v56  ;;  %v645_v28 = vpop.permute.xlu2 %644 }
 0x7fa   :  { %724 = vmatpush.msra.mxu0 %v672_v49 }
 0x7fb   :  { %v1210_v30 = vsel %vm202_vm6, %v561_v29, 0.0  ;;  %693 = vmatpush.msra.mxu3 %v667_v3 }
 0x7fc   :  { %831 = vtanh.f32 %v1210_v30 }
 0x7fd   :  { %694 = vmatpush.msra.mxu3 %v666_v58 }
 0x7ff   :  { %695 = vmatpush.msra.mxu3 %v665_v59 }
 0x801   :  { %696 = vmatpush.msra.mxu3 %v664_v61  ;;  %v653_v10 = vpop.permute.xlu2 %652 }
 0x802   :  { %v832_v31 = vpop.eup %831 }
 0x803   :  { %v566_v39 = vmul.f32 %v832_v31, %v564_v32  ;;  %697 = vmatpush.msra.mxu3 %v663_v63  ;;  %v646_v31 = vmul.f32 %v645_v28, %v1201_v1 }
 0x805   :  { %584 = vmatmul.f32.vlgmr.msra.gmra.mxu2 %v566_v39  ;;  %698 = vmatpush.msra.mxu3 %v662_v2 }
 0x807   :  { %699 = vmatpush.msra.mxu3 %v661_v21 }
 0x809   :  { %700 = vmatpush.msra.mxu3 %v660_v23 }
 0x80b   :  { %701 = vmatpush.msra.mxu3 %v659_v25 }
 0x80d   :  { %702 = vmatpush.msra.mxu3 %v658_v27 }
 0x80f   :  { %703 = vmatpush.msra.mxu3 %v657_v42 }
 0x811   :  { %704 = vmatpush.msra.mxu3 %v656_v44 }
 0x888   :  { %v585_v35 = vpop.f32.mrf.mxu2 }
 0x889   :  { %v588_v36 = vadd.f32 %v585_v35, %v124_v34 }
 0x88b   :  { %v759_v37 = vmul.f32 -1.442695, %v588_v36 }
 0x88d   :  { %833 = vpow2.f32 %v759_v37 }
 0x893   :  { %v834_v52 = vpop.eup %833 }
 0x894   :  { %v592_v55 = vadd.f32 1.0, %v834_v52 }
 0x896   :  { %835 = vrcp.f32 %v592_v55  ;;  %v604_v4 = vand.u32 2147483648, %v592_v55  ;;  %v602_v6 = vand.u32 2147483647, %v592_v55  ;;  %vm598_vm9 = vweird.f32 %v592_v55 }
 0x897   :  { %837 = vtanh.f32 %v588_v36 }
 0x898   :  { %v605_v14 = vor.u32 1.1754944e-38, %v604_v4  ;;  %vm603_vm11 = vcmp.eq.f32.partialorder %v602_v6, 8.507059e+37 }
 0x89c   :  { %v836_v60 = vpop.eup %835 }
 0x89d   :  { %v594_v62 = vmul.f32 %v836_v60, %v592_v55  ;;  %vm599_vm8 = vweird.f32 %v836_v60  ;;  %v838_v16 = vpop.eup %837 }
 0x89e   :  { %vm600_vm10 = vmor %vm598_vm9, %vm599_vm8 }
 0x89f   :  { %v595_v0 = vsub.f32 1.0, %v594_v62 }
 0x8a1   :  { %v596_v5 = vmul.f32 %v836_v60, %v595_v0 }
 0x8a3   :  { %v597_v11 = vadd.f32 %v836_v60, %v596_v5 }
 0x8a5   :  { %v601_v15 = vsel %vm600_vm10, %v836_v60, %v597_v11 }
 0x8a6   :  { %v606_v17 = vsel %vm603_vm11, %v605_v14, %v601_v15 }
 0x8a7   :  { %v609_v19 = vsel %vm201_vm3, %v606_v17, %v838_v16 }
 0x8a8   :  { %613 = vrot.lane.b32.xlu1 %v609_v19, %s903_s23  ;;  %610 = vrot.lane.b32.xlu0 %v609_v19, %s902_s1 }
 0x8b0   :  { %618 = vrot.lane.b32.xlu1 %v609_v19, %s901_s0  ;;  %647 = vrot.lane.b32.xlu0 %v1201_v1, %s903_s23 }
 0x91a   :  { %v614_v50 = vpop.permute.xlu1 %613  ;;  %v611_v7 = vpop.permute.xlu0 %610 }
 0x91b   :  { %v615_v8 = vmul.f32 %v614_v50, %v1210_v30  ;;  %v612_v9 = vmul.f32 %v611_v7, %v609_v19 }
 0x91d   :  { %v616_v12 = vadd.f32 %v615_v8, %v612_v9 }
 0x91f   :  { %v617_v13 = vsel %vm202_vm6, %v616_v12, 0.0 }
 0x920   :  { %839 = vtanh.f32 %v617_v13 }
 0x922   :  { %v648_v29 = vpop.permute.xlu0 %647  ;;  %v619_v35 = vpop.permute.xlu1 %618 }
 0x923   :  { %v649_v32 = vmul.f32 0.0, %v648_v29 }
 0x925   :  { %v650_v39 = vadd.f32 %v649_v32, %v646_v31 }
 0x926   :  { %v840_v34 = vpop.eup %839 }
 0x927   :  { %v621_v36 = vmul.f32 %v840_v34, %v619_v35  ;;  %v651_v37 = vsel %vm202_vm6, %v650_v39, 0.0 }
 0x928   :  { %841 = vtanh.f32 %v651_v37 }
 0x929   :  { %705 = vmatmul.f32.vlgmr.msra.gmra.mxu3 %v621_v36 }
 0x92e   :  { %v842_v30 = vpop.eup %841 }
 0x92f   :  { %v655_v38 = vmul.f32 %v842_v30, %v653_v10 }
 0x931   :  { %725 = vmatmul.f32.vlgmr.msra.gmra.mxu0 %v655_v38 }
 0x9ac   :  { %v706_v41 = vpop.f32.mrf.mxu3 }
 0x9ad   :  { %v707_v51 = vadd.f32 %v706_v41, %v688_v54 }
 0x9ae   :  { %v726_v52 = vpop.f32.mrf.mxu0 }
 0x9af   :  { %v727_v53 = vadd.f32 %v726_v52, %v707_v51 }
 0x9b1   :  { %729 = vst [vmem:[%s1233_s2] sm:$0xff] %v727_v53 }
 0x9b2   :  { %734 = vsyncpa [#allocation4], 1 }
 0x9b3   :  { %735 = vsyncpa [#allocation6], 1 }

</bundles_post_ra>
